<compile_context>
chip_gen: v5e
topology: v5e:2x2
jax: 0.10.0
libtpu: 0.0.40
codegen_flags: <defaults>
</compile_context>

<pallas_src>
import functools
import numpy as np
import jax
import jax.numpy as jnp
from jax import lax
from jax.experimental import pallas as pl
from jax.experimental.pallas import tpu as pltpu

HIDDEN = 64
FC1 = 32


def lstm_kernel(x_ref, wih_ref, whh_ref, b_ref,
                w1_ref, b1_ref, w2_ref, b2_ref,
                out_ref, *, t_steps, b_pad):
    H = HIDDEN

    # ---- 1) Hoisted input projection: one GEMM over the whole sequence. ----
    # x_ref: (T*B_pad, F) -> x_proj: (T*B_pad, 4H); fused bias added here so
    # the recurrence does no bias broadcast.
    x_proj = (jnp.dot(x_ref[...], wih_ref[...],
                      preferred_element_type=jnp.float32)
              + b_ref[...])

    whh = whh_ref[...]                                  # (H, 4H), loaded once

    # Lane-wise mask selecting the "g" (cell) gate block (PyTorch order i,f,g,o).
    col = lax.broadcasted_iota(jnp.int32, (b_pad, 4 * H), 1)
    is_g = (col >= 2 * H) & (col < 3 * H)

    h = jnp.zeros((b_pad, H), jnp.float32)
    c = jnp.zeros((b_pad, H), jnp.float32)

    # ---- 2) Serial recurrence, fully unrolled (static T, static slices). ----
    for t in range(t_steps):
        pre = (x_proj[t * b_pad:(t + 1) * b_pad, :]     # (B_pad, 4H)
               + jnp.dot(h, whh, preferred_element_type=jnp.float32))
        # Full-width activations (EUP slot, otherwise idle) + lane-wise select.
        # tanh is applied to the RAW pre-activation of the g block.
        act = jnp.where(is_g, jnp.tanh(pre), jax.nn.sigmoid(pre))
        i_g = act[:, 0 * H:1 * H]
        f_g = act[:, 1 * H:2 * H]
        g_g = act[:, 2 * H:3 * H]
        o_g = act[:, 3 * H:4 * H]
        c = f_g * c + i_g * g_g
        h = o_g * jnp.tanh(c)

    # ---- 3) FC head on the last hidden state. ----
    z1 = jnp.maximum(
        jnp.dot(h, w1_ref[...], preferred_element_type=jnp.float32)
        + b1_ref[...], 0.0)
    z2 = (jnp.dot(z1, w2_ref[...], preferred_element_type=jnp.float32)
          + b2_ref[...])
    out_ref[...] = z2.astype(out_ref.dtype)


def lstm_model_forward(x, params):
    """x: (B, T, F) float32 (batch_first, like PyTorch). Returns (B, 1)."""
    wih_t, whh_t, b, w1_t, b1, w2_t, b2 = params
    B, T, F = x.shape
    B_pad = max(8, ((B + 7) // 8) * 8)                  # dense sublanes

    x_p = jnp.pad(x.astype(jnp.float32), ((0, B_pad - B), (0, 0), (0, 0)))
    # Time-major and flattened so the input projection is one big GEMM.
    x_flat = jnp.transpose(x_p, (1, 0, 2)).reshape(T * B_pad, F)

    full = lambda shape: pl.BlockSpec(shape, lambda i: tuple(0 for _ in shape))

    out = pl.pallas_call(
        functools.partial(lstm_kernel, t_steps=T, b_pad=B_pad),
        out_shape=jax.ShapeDtypeStruct((B_pad, 1), jnp.float32),
        grid_spec=pltpu.PrefetchScalarGridSpec(
            num_scalar_prefetch=0,
            grid=(1,),                 # single step: all operands loaded once
            in_specs=[
                full((T * B_pad, F)),  # whole sequence (tiny; fits VMEM)
                full(wih_t.shape),     # (F, 4H)
                full(whh_t.shape),     # (H, 4H)
                full(b.shape),         # (1, 4H)
                full(w1_t.shape),      # (H, 32)
                full(b1.shape),        # (1, 32)
                full(w2_t.shape),      # (32, 1)
                full(b2.shape),        # (1, 1)
            ],
            out_specs=pl.BlockSpec((B_pad, 1), lambda i: (0, 0)),
        ),
        compiler_params=pltpu.CompilerParams(
            dimension_semantics=("arbitrary",)),
    )(x_flat, wih_t, whh_t, b, w1_t, b1, w2_t, b2)
    return out[:B]


def lstm_model_ref(x, params):
    """Pure-JAX reference of the PyTorch forward."""
    wih_t, whh_t, b, w1_t, b1, w2_t, b2 = params
    B, T, F = x.shape
    H = HIDDEN

    def step(carry, x_t):
        h, c = carry
        gates = x_t @ wih_t + h @ whh_t + b
        i = jax.nn.sigmoid(gates[:, 0 * H:1 * H])
        f = jax.nn.sigmoid(gates[:, 1 * H:2 * H])
        g = jnp.tanh(gates[:, 2 * H:3 * H])
        o = jax.nn.sigmoid(gates[:, 3 * H:4 * H])
        c = f * c + i * g
        h = o * jnp.tanh(c)
        return (h, c), None

    h0 = jnp.zeros((B, H), jnp.float32)
    c0 = jnp.zeros((B, H), jnp.float32)
    (h, _), _ = lax.scan(step, (h0, c0), jnp.transpose(x, (1, 0, 2)))
    z = jnp.maximum(h @ w1_t + b1, 0.0)
    return z @ w2_t + b2


def init_params(key, n_features):
    """Deterministic init matching PyTorch LSTM/Linear param shapes."""
    H = HIDDEN
    ks = jax.random.split(key, 8)
    u = lambda k, shape, bound: jax.random.uniform(
        k, shape, jnp.float32, minval=-bound, maxval=bound)
    s_lstm = 1.0 / np.sqrt(H)
    w_ih = u(ks[0], (4 * H, n_features), s_lstm)   # (4H, F)
    w_hh = u(ks[1], (4 * H, H), s_lstm)            # (4H, H)
    b_ih = u(ks[2], (4 * H,), s_lstm)
    b_hh = u(ks[3], (4 * H,), s_lstm)
    s1 = 1.0 / np.sqrt(H)
    w1 = u(ks[4], (FC1, H), s1)                    # (32, 64)
    b1 = u(ks[5], (FC1,), s1)
    s2 = 1.0 / np.sqrt(FC1)
    w2 = u(ks[6], (1, FC1), s2)                    # (1, 32)
    b2 = u(ks[7], (1,), s2)
    # Pre-transpose / fuse biases for the kernel.
    return (w_ih.T,                        # (F, 4H)
            w_hh.T,                        # (H, 4H)
            (b_ih + b_hh).reshape(1, -1),  # (1, 4H)
            w1.T,                          # (64, 32)
            b1.reshape(1, -1),             # (1, 32)
            w2.T,                          # (32, 1)
            b2.reshape(1, -1))             # (1, 1)


if __name__ == "__main__":
    B, T, F = 2, 8, 16
    key = jax.random.PRNGKey(0)
    kx, kp = jax.random.split(key)
    x = jax.random.normal(kx, (B, T, F), jnp.float32)
    params = init_params(kp, F)

    fwd = jax.jit(lstm_model_forward)
    out = jax.block_until_ready(fwd(x, params))
    ref = jax.block_until_ready(lstm_model_ref(x, params))

    np.testing.assert_allclose(np.asarray(out), np.asarray(ref),
                               rtol=1e-4, atol=1e-5)
    assert out.shape == (B, 1)
    print("KERNEL_OK")
</pallas_src>

<mosaic_0001>
module attributes {stable_mosaic.version = 11 : i64} {
  func.func @lstm_kernel(%arg0: i32, %arg1: memref<64x16xf32, #tpu.memory_space<vmem>>, %arg2: memref<16x256xf32, #tpu.memory_space<vmem>>, %arg3: memref<64x256xf32, #tpu.memory_space<vmem>>, %arg4: memref<1x256xf32, #tpu.memory_space<vmem>>, %arg5: memref<64x32xf32, #tpu.memory_space<vmem>>, %arg6: memref<1x32xf32, #tpu.memory_space<vmem>>, %arg7: memref<32x1xf32, #tpu.memory_space<vmem>>, %arg8: memref<1x1xf32, #tpu.memory_space<vmem>>, %arg9: memref<8x1xf32, #tpu.memory_space<vmem>>) attributes {dimension_semantics = [#tpu.dimension_semantics<arbitrary>], iteration_bounds = array<i64: 1>, scalar_prefetch = 0 : i64, scratch_operands = 0 : i64, tpu.core_type = #tpu.core_type<tc>, window_params = [{pipeline_mode = #tpu.pipeline_mode<synchronous>, transform_indices = @transform_0, window_bounds = array<i64: 64, 16>}, {pipeline_mode = #tpu.pipeline_mode<synchronous>, transform_indices = @transform_1, window_bounds = array<i64: 16, 256>}, {pipeline_mode = #tpu.pipeline_mode<synchronous>, transform_indices = @transform_2, window_bounds = array<i64: 64, 256>}, {pipeline_mode = #tpu.pipeline_mode<synchronous>, transform_indices = @transform_3, window_bounds = array<i64: 1, 256>}, {pipeline_mode = #tpu.pipeline_mode<synchronous>, transform_indices = @transform_4, window_bounds = array<i64: 64, 32>}, {pipeline_mode = #tpu.pipeline_mode<synchronous>, transform_indices = @transform_5, window_bounds = array<i64: 1, 32>}, {pipeline_mode = #tpu.pipeline_mode<synchronous>, transform_indices = @transform_6, window_bounds = array<i64: 32, 1>}, {pipeline_mode = #tpu.pipeline_mode<synchronous>, transform_indices = @transform_7, window_bounds = array<i64: 1, 1>}, {pipeline_mode = #tpu.pipeline_mode<synchronous>, transform_indices = @transform_8, window_bounds = array<i64: 8, 1>}]} {
    %c0 = arith.constant 0 : index
    %c0_0 = arith.constant 0 : index
    %0 = vector.load %arg1[%c0, %c0_0] : memref<64x16xf32, #tpu.memory_space<vmem>>, vector<64x16xf32>
    %c0_1 = arith.constant 0 : index
    %c0_2 = arith.constant 0 : index
    %1 = vector.load %arg2[%c0_1, %c0_2] : memref<16x256xf32, #tpu.memory_space<vmem>>, vector<16x256xf32>
    %cst = arith.constant dense<0.000000e+00> : vector<64x256xf32>
    %2 = tpu.matmul %0, %1, %cst {dimension_numbers = #tpu.dot_dimension_numbers<[1], [0], [0], [1], [0, 0, 1, 1], [], []>} : vector<64x16xf32>, vector<16x256xf32>, vector<64x256xf32> -> vector<64x256xf32>
    %c0_3 = arith.constant 0 : index
    %c0_4 = arith.constant 0 : index
    %3 = vector.load %arg4[%c0_3, %c0_4] : memref<1x256xf32, #tpu.memory_space<vmem>>, vector<1x256xf32>
    %4 = vector.broadcast %3 : vector<1x256xf32> to vector<64x256xf32>
    %5 = arith.addf %2, %4 : vector<64x256xf32>
    %c0_5 = arith.constant 0 : index
    %c0_6 = arith.constant 0 : index
    %6 = vector.load %arg3[%c0_5, %c0_6] : memref<64x256xf32, #tpu.memory_space<vmem>>, vector<64x256xf32>
    %7 = tpu.iota {dimensions = array<i32: 1>} : vector<8x256xi32>
    %c128_i32 = arith.constant 128 : i32
    %8 = vector.broadcast %c128_i32 : i32 to vector<8x256xi32>
    %9 = arith.cmpi sge, %7, %8 : vector<8x256xi32>
    %c192_i32 = arith.constant 192 : i32
    %10 = vector.broadcast %c192_i32 : i32 to vector<8x256xi32>
    %11 = arith.cmpi slt, %7, %10 : vector<8x256xi32>
    %12 = arith.andi %9, %11 : vector<8x256xi1>
    %cst_7 = arith.constant 0.000000e+00 : f32
    %13 = vector.broadcast %cst_7 : f32 to vector<8x64xf32>
    %cst_8 = arith.constant 0.000000e+00 : f32
    %14 = vector.broadcast %cst_8 : f32 to vector<8x64xf32>
    %15 = vector.extract_strided_slice %5 {offsets = [0, 0], sizes = [8, 256], strides = [1, 1]} : vector<64x256xf32> to vector<8x256xf32>
    %cst_9 = arith.constant dense<0.000000e+00> : vector<8x256xf32>
    %16 = tpu.matmul %13, %6, %cst_9 {dimension_numbers = #tpu.dot_dimension_numbers<[1], [0], [0], [1], [0, 0, 1, 1], [], []>} : vector<8x64xf32>, vector<64x256xf32>, vector<8x256xf32> -> vector<8x256xf32>
    %17 = arith.addf %15, %16 : vector<8x256xf32>
    %18 = math.tanh %17 : vector<8x256xf32>
    %19 = arith.negf %17 : vector<8x256xf32>
    %20 = math.exp %19 : vector<8x256xf32>
    %cst_10 = arith.constant 1.000000e+00 : f32
    %21 = vector.broadcast %cst_10 : f32 to vector<8x256xf32>
    %22 = arith.addf %21, %20 : vector<8x256xf32>
    %23 = arith.divf %21, %22 : vector<8x256xf32>
    %24 = arith.select %12, %18, %23 : vector<8x256xi1>, vector<8x256xf32>
    %25 = vector.extract_strided_slice %24 {offsets = [0, 0], sizes = [8, 64], strides = [1, 1]} : vector<8x256xf32> to vector<8x64xf32>
    %26 = vector.extract_strided_slice %24 {offsets = [0, 64], sizes = [8, 64], strides = [1, 1]} : vector<8x256xf32> to vector<8x64xf32>
    %27 = vector.extract_strided_slice %24 {offsets = [0, 128], sizes = [8, 64], strides = [1, 1]} : vector<8x256xf32> to vector<8x64xf32>
    %28 = vector.extract_strided_slice %24 {offsets = [0, 192], sizes = [8, 64], strides = [1, 1]} : vector<8x256xf32> to vector<8x64xf32>
    %29 = arith.mulf %26, %14 : vector<8x64xf32>
    %30 = arith.mulf %25, %27 : vector<8x64xf32>
    %31 = arith.addf %29, %30 : vector<8x64xf32>
    %32 = math.tanh %31 : vector<8x64xf32>
    %33 = arith.mulf %28, %32 : vector<8x64xf32>
    %34 = vector.extract_strided_slice %5 {offsets = [8, 0], sizes = [8, 256], strides = [1, 1]} : vector<64x256xf32> to vector<8x256xf32>
    %cst_11 = arith.constant dense<0.000000e+00> : vector<8x256xf32>
    %35 = tpu.matmul %33, %6, %cst_11 {dimension_numbers = #tpu.dot_dimension_numbers<[1], [0], [0], [1], [0, 0, 1, 1], [], []>} : vector<8x64xf32>, vector<64x256xf32>, vector<8x256xf32> -> vector<8x256xf32>
    %36 = arith.addf %34, %35 : vector<8x256xf32>
    %37 = math.tanh %36 : vector<8x256xf32>
    %38 = arith.negf %36 : vector<8x256xf32>
    %39 = math.exp %38 : vector<8x256xf32>
    %cst_12 = arith.constant 1.000000e+00 : f32
    %40 = vector.broadcast %cst_12 : f32 to vector<8x256xf32>
    %41 = arith.addf %40, %39 : vector<8x256xf32>
    %42 = arith.divf %40, %41 : vector<8x256xf32>
    %43 = arith.select %12, %37, %42 : vector<8x256xi1>, vector<8x256xf32>
    %44 = vector.extract_strided_slice %43 {offsets = [0, 0], sizes = [8, 64], strides = [1, 1]} : vector<8x256xf32> to vector<8x64xf32>
    %45 = vector.extract_strided_slice %43 {offsets = [0, 64], sizes = [8, 64], strides = [1, 1]} : vector<8x256xf32> to vector<8x64xf32>
    %46 = vector.extract_strided_slice %43 {offsets = [0, 128], sizes = [8, 64], strides = [1, 1]} : vector<8x256xf32> to vector<8x64xf32>
    %47 = vector.extract_strided_slice %43 {offsets = [0, 192], sizes = [8, 64], strides = [1, 1]} : vector<8x256xf32> to vector<8x64xf32>
    %48 = arith.mulf %45, %31 : vector<8x64xf32>
    %49 = arith.mulf %44, %46 : vector<8x64xf32>
    %50 = arith.addf %48, %49 : vector<8x64xf32>
    %51 = math.tanh %50 : vector<8x64xf32>
    %52 = arith.mulf %47, %51 : vector<8x64xf32>
    %53 = vector.extract_strided_slice %5 {offsets = [16, 0], sizes = [8, 256], strides = [1, 1]} : vector<64x256xf32> to vector<8x256xf32>
    %cst_13 = arith.constant dense<0.000000e+00> : vector<8x256xf32>
    %54 = tpu.matmul %52, %6, %cst_13 {dimension_numbers = #tpu.dot_dimension_numbers<[1], [0], [0], [1], [0, 0, 1, 1], [], []>} : vector<8x64xf32>, vector<64x256xf32>, vector<8x256xf32> -> vector<8x256xf32>
    %55 = arith.addf %53, %54 : vector<8x256xf32>
    %56 = math.tanh %55 : vector<8x256xf32>
    %57 = arith.negf %55 : vector<8x256xf32>
    %58 = math.exp %57 : vector<8x256xf32>
    %cst_14 = arith.constant 1.000000e+00 : f32
    %59 = vector.broadcast %cst_14 : f32 to vector<8x256xf32>
    %60 = arith.addf %59, %58 : vector<8x256xf32>
    %61 = arith.divf %59, %60 : vector<8x256xf32>
    %62 = arith.select %12, %56, %61 : vector<8x256xi1>, vector<8x256xf32>
    %63 = vector.extract_strided_slice %62 {offsets = [0, 0], sizes = [8, 64], strides = [1, 1]} : vector<8x256xf32> to vector<8x64xf32>
    %64 = vector.extract_strided_slice %62 {offsets = [0, 64], sizes = [8, 64], strides = [1, 1]} : vector<8x256xf32> to vector<8x64xf32>
    %65 = vector.extract_strided_slice %62 {offsets = [0, 128], sizes = [8, 64], strides = [1, 1]} : vector<8x256xf32> to vector<8x64xf32>
    %66 = vector.extract_strided_slice %62 {offsets = [0, 192], sizes = [8, 64], strides = [1, 1]} : vector<8x256xf32> to vector<8x64xf32>
    %67 = arith.mulf %64, %50 : vector<8x64xf32>
    %68 = arith.mulf %63, %65 : vector<8x64xf32>
    %69 = arith.addf %67, %68 : vector<8x64xf32>
    %70 = math.tanh %69 : vector<8x64xf32>
    %71 = arith.mulf %66, %70 : vector<8x64xf32>
    %72 = vector.extract_strided_slice %5 {offsets = [24, 0], sizes = [8, 256], strides = [1, 1]} : vector<64x256xf32> to vector<8x256xf32>
    %cst_15 = arith.constant dense<0.000000e+00> : vector<8x256xf32>
    %73 = tpu.matmul %71, %6, %cst_15 {dimension_numbers = #tpu.dot_dimension_numbers<[1], [0], [0], [1], [0, 0, 1, 1], [], []>} : vector<8x64xf32>, vector<64x256xf32>, vector<8x256xf32> -> vector<8x256xf32>
    %74 = arith.addf %72, %73 : vector<8x256xf32>
    %75 = math.tanh %74 : vector<8x256xf32>
    %76 = arith.negf %74 : vector<8x256xf32>
    %77 = math.exp %76 : vector<8x256xf32>
    %cst_16 = arith.constant 1.000000e+00 : f32
    %78 = vector.broadcast %cst_16 : f32 to vector<8x256xf32>
    %79 = arith.addf %78, %77 : vector<8x256xf32>
    %80 = arith.divf %78, %79 : vector<8x256xf32>
    %81 = arith.select %12, %75, %80 : vector<8x256xi1>, vector<8x256xf32>
    %82 = vector.extract_strided_slice %81 {offsets = [0, 0], sizes = [8, 64], strides = [1, 1]} : vector<8x256xf32> to vector<8x64xf32>
    %83 = vector.extract_strided_slice %81 {offsets = [0, 64], sizes = [8, 64], strides = [1, 1]} : vector<8x256xf32> to vector<8x64xf32>
    %84 = vector.extract_strided_slice %81 {offsets = [0, 128], sizes = [8, 64], strides = [1, 1]} : vector<8x256xf32> to vector<8x64xf32>
    %85 = vector.extract_strided_slice %81 {offsets = [0, 192], sizes = [8, 64], strides = [1, 1]} : vector<8x256xf32> to vector<8x64xf32>
    %86 = arith.mulf %83, %69 : vector<8x64xf32>
    %87 = arith.mulf %82, %84 : vector<8x64xf32>
    %88 = arith.addf %86, %87 : vector<8x64xf32>
    %89 = math.tanh %88 : vector<8x64xf32>
    %90 = arith.mulf %85, %89 : vector<8x64xf32>
    %91 = vector.extract_strided_slice %5 {offsets = [32, 0], sizes = [8, 256], strides = [1, 1]} : vector<64x256xf32> to vector<8x256xf32>
    %cst_17 = arith.constant dense<0.000000e+00> : vector<8x256xf32>
    %92 = tpu.matmul %90, %6, %cst_17 {dimension_numbers = #tpu.dot_dimension_numbers<[1], [0], [0], [1], [0, 0, 1, 1], [], []>} : vector<8x64xf32>, vector<64x256xf32>, vector<8x256xf32> -> vector<8x256xf32>
    %93 = arith.addf %91, %92 : vector<8x256xf32>
    %94 = math.tanh %93 : vector<8x256xf32>
    %95 = arith.negf %93 : vector<8x256xf32>
    %96 = math.exp %95 : vector<8x256xf32>
    %cst_18 = arith.constant 1.000000e+00 : f32
    %97 = vector.broadcast %cst_18 : f32 to vector<8x256xf32>
    %98 = arith.addf %97, %96 : vector<8x256xf32>
    %99 = arith.divf %97, %98 : vector<8x256xf32>
    %100 = arith.select %12, %94, %99 : vector<8x256xi1>, vector<8x256xf32>
    %101 = vector.extract_strided_slice %100 {offsets = [0, 0], sizes = [8, 64], strides = [1, 1]} : vector<8x256xf32> to vector<8x64xf32>
    %102 = vector.extract_strided_slice %100 {offsets = [0, 64], sizes = [8, 64], strides = [1, 1]} : vector<8x256xf32> to vector<8x64xf32>
    %103 = vector.extract_strided_slice %100 {offsets = [0, 128], sizes = [8, 64], strides = [1, 1]} : vector<8x256xf32> to vector<8x64xf32>
    %104 = vector.extract_strided_slice %100 {offsets = [0, 192], sizes = [8, 64], strides = [1, 1]} : vector<8x256xf32> to vector<8x64xf32>
    %105 = arith.mulf %102, %88 : vector<8x64xf32>
    %106 = arith.mulf %101, %103 : vector<8x64xf32>
    %107 = arith.addf %105, %106 : vector<8x64xf32>
    %108 = math.tanh %107 : vector<8x64xf32>
    %109 = arith.mulf %104, %108 : vector<8x64xf32>
    %110 = vector.extract_strided_slice %5 {offsets = [40, 0], sizes = [8, 256], strides = [1, 1]} : vector<64x256xf32> to vector<8x256xf32>
    %cst_19 = arith.constant dense<0.000000e+00> : vector<8x256xf32>
    %111 = tpu.matmul %109, %6, %cst_19 {dimension_numbers = #tpu.dot_dimension_numbers<[1], [0], [0], [1], [0, 0, 1, 1], [], []>} : vector<8x64xf32>, vector<64x256xf32>, vector<8x256xf32> -> vector<8x256xf32>
    %112 = arith.addf %110, %111 : vector<8x256xf32>
    %113 = math.tanh %112 : vector<8x256xf32>
    %114 = arith.negf %112 : vector<8x256xf32>
    %115 = math.exp %114 : vector<8x256xf32>
    %cst_20 = arith.constant 1.000000e+00 : f32
    %116 = vector.broadcast %cst_20 : f32 to vector<8x256xf32>
    %117 = arith.addf %116, %115 : vector<8x256xf32>
    %118 = arith.divf %116, %117 : vector<8x256xf32>
    %119 = arith.select %12, %113, %118 : vector<8x256xi1>, vector<8x256xf32>
    %120 = vector.extract_strided_slice %119 {offsets = [0, 0], sizes = [8, 64], strides = [1, 1]} : vector<8x256xf32> to vector<8x64xf32>
    %121 = vector.extract_strided_slice %119 {offsets = [0, 64], sizes = [8, 64], strides = [1, 1]} : vector<8x256xf32> to vector<8x64xf32>
    %122 = vector.extract_strided_slice %119 {offsets = [0, 128], sizes = [8, 64], strides = [1, 1]} : vector<8x256xf32> to vector<8x64xf32>
    %123 = vector.extract_strided_slice %119 {offsets = [0, 192], sizes = [8, 64], strides = [1, 1]} : vector<8x256xf32> to vector<8x64xf32>
    %124 = arith.mulf %121, %107 : vector<8x64xf32>
    %125 = arith.mulf %120, %122 : vector<8x64xf32>
    %126 = arith.addf %124, %125 : vector<8x64xf32>
    %127 = math.tanh %126 : vector<8x64xf32>
    %128 = arith.mulf %123, %127 : vector<8x64xf32>
    %129 = vector.extract_strided_slice %5 {offsets = [48, 0], sizes = [8, 256], strides = [1, 1]} : vector<64x256xf32> to vector<8x256xf32>
    %cst_21 = arith.constant dense<0.000000e+00> : vector<8x256xf32>
    %130 = tpu.matmul %128, %6, %cst_21 {dimension_numbers = #tpu.dot_dimension_numbers<[1], [0], [0], [1], [0, 0, 1, 1], [], []>} : vector<8x64xf32>, vector<64x256xf32>, vector<8x256xf32> -> vector<8x256xf32>
    %131 = arith.addf %129, %130 : vector<8x256xf32>
    %132 = math.tanh %131 : vector<8x256xf32>
    %133 = arith.negf %131 : vector<8x256xf32>
    %134 = math.exp %133 : vector<8x256xf32>
    %cst_22 = arith.constant 1.000000e+00 : f32
    %135 = vector.broadcast %cst_22 : f32 to vector<8x256xf32>
    %136 = arith.addf %135, %134 : vector<8x256xf32>
    %137 = arith.divf %135, %136 : vector<8x256xf32>
    %138 = arith.select %12, %132, %137 : vector<8x256xi1>, vector<8x256xf32>
    %139 = vector.extract_strided_slice %138 {offsets = [0, 0], sizes = [8, 64], strides = [1, 1]} : vector<8x256xf32> to vector<8x64xf32>
    %140 = vector.extract_strided_slice %138 {offsets = [0, 64], sizes = [8, 64], strides = [1, 1]} : vector<8x256xf32> to vector<8x64xf32>
    %141 = vector.extract_strided_slice %138 {offsets = [0, 128], sizes = [8, 64], strides = [1, 1]} : vector<8x256xf32> to vector<8x64xf32>
    %142 = vector.extract_strided_slice %138 {offsets = [0, 192], sizes = [8, 64], strides = [1, 1]} : vector<8x256xf32> to vector<8x64xf32>
    %143 = arith.mulf %140, %126 : vector<8x64xf32>
    %144 = arith.mulf %139, %141 : vector<8x64xf32>
    %145 = arith.addf %143, %144 : vector<8x64xf32>
    %146 = math.tanh %145 : vector<8x64xf32>
    %147 = arith.mulf %142, %146 : vector<8x64xf32>
    %148 = vector.extract_strided_slice %5 {offsets = [56, 0], sizes = [8, 256], strides = [1, 1]} : vector<64x256xf32> to vector<8x256xf32>
    %cst_23 = arith.constant dense<0.000000e+00> : vector<8x256xf32>
    %149 = tpu.matmul %147, %6, %cst_23 {dimension_numbers = #tpu.dot_dimension_numbers<[1], [0], [0], [1], [0, 0, 1, 1], [], []>} : vector<8x64xf32>, vector<64x256xf32>, vector<8x256xf32> -> vector<8x256xf32>
    %150 = arith.addf %148, %149 : vector<8x256xf32>
    %151 = math.tanh %150 : vector<8x256xf32>
    %152 = arith.negf %150 : vector<8x256xf32>
    %153 = math.exp %152 : vector<8x256xf32>
    %cst_24 = arith.constant 1.000000e+00 : f32
    %154 = vector.broadcast %cst_24 : f32 to vector<8x256xf32>
    %155 = arith.addf %154, %153 : vector<8x256xf32>
    %156 = arith.divf %154, %155 : vector<8x256xf32>
    %157 = arith.select %12, %151, %156 : vector<8x256xi1>, vector<8x256xf32>
    %158 = vector.extract_strided_slice %157 {offsets = [0, 0], sizes = [8, 64], strides = [1, 1]} : vector<8x256xf32> to vector<8x64xf32>
    %159 = vector.extract_strided_slice %157 {offsets = [0, 64], sizes = [8, 64], strides = [1, 1]} : vector<8x256xf32> to vector<8x64xf32>
    %160 = vector.extract_strided_slice %157 {offsets = [0, 128], sizes = [8, 64], strides = [1, 1]} : vector<8x256xf32> to vector<8x64xf32>
    %161 = vector.extract_strided_slice %157 {offsets = [0, 192], sizes = [8, 64], strides = [1, 1]} : vector<8x256xf32> to vector<8x64xf32>
    %162 = arith.mulf %159, %145 : vector<8x64xf32>
    %163 = arith.mulf %158, %160 : vector<8x64xf32>
    %164 = arith.addf %162, %163 : vector<8x64xf32>
    %165 = math.tanh %164 : vector<8x64xf32>
    %166 = arith.mulf %161, %165 : vector<8x64xf32>
    %c0_25 = arith.constant 0 : index
    %c0_26 = arith.constant 0 : index
    %167 = vector.load %arg5[%c0_25, %c0_26] : memref<64x32xf32, #tpu.memory_space<vmem>>, vector<64x32xf32>
    %cst_27 = arith.constant dense<0.000000e+00> : vector<8x32xf32>
    %168 = tpu.matmul %166, %167, %cst_27 {dimension_numbers = #tpu.dot_dimension_numbers<[1], [0], [0], [1], [0, 0, 1, 1], [], []>} : vector<8x64xf32>, vector<64x32xf32>, vector<8x32xf32> -> vector<8x32xf32>
    %c0_28 = arith.constant 0 : index
    %c0_29 = arith.constant 0 : index
    %169 = vector.load %arg6[%c0_28, %c0_29] : memref<1x32xf32, #tpu.memory_space<vmem>>, vector<1x32xf32>
    %170 = vector.broadcast %169 : vector<1x32xf32> to vector<8x32xf32>
    %171 = arith.addf %168, %170 : vector<8x32xf32>
    %cst_30 = arith.constant 0.000000e+00 : f32
    %172 = vector.broadcast %cst_30 : f32 to vector<8x32xf32>
    %173 = arith.maximumf %171, %172 : vector<8x32xf32>
    %c0_31 = arith.constant 0 : index
    %c0_32 = arith.constant 0 : index
    %174 = vector.load %arg7[%c0_31, %c0_32] : memref<32x1xf32, #tpu.memory_space<vmem>>, vector<32x1xf32>
    %cst_33 = arith.constant dense<0.000000e+00> : vector<8x1xf32>
    %175 = tpu.matmul %173, %174, %cst_33 {dimension_numbers = #tpu.dot_dimension_numbers<[1], [0], [0], [1], [0, 0, 1, 1], [], []>} : vector<8x32xf32>, vector<32x1xf32>, vector<8x1xf32> -> vector<8x1xf32>
    %c0_34 = arith.constant 0 : index
    %c0_35 = arith.constant 0 : index
    %176 = vector.load %arg8[%c0_34, %c0_35] : memref<1x1xf32, #tpu.memory_space<vmem>>, vector<1x1xf32>
    %177 = vector.broadcast %176 : vector<1x1xf32> to vector<8x1xf32>
    %178 = arith.addf %175, %177 : vector<8x1xf32>
    %c0_36 = arith.constant 0 : index
    %c0_37 = arith.constant 0 : index
    %179 = vector.load %arg9[%c0_36, %c0_37] : memref<8x1xf32, #tpu.memory_space<vmem>>, vector<8x1xf32>
    tpu.vector_store %arg9[%c0_36, %c0_37], %178 {strides = array<i32>} : memref<8x1xf32, #tpu.memory_space<vmem>>, vector<8x1xf32>,
    return
  }
  func.func @transform_0(%arg0: i32) -> (i32, i32) {
    %c0_i32 = arith.constant 0 : i32
    %c0_i32_0 = arith.constant 0 : i32
    %c0_i32_1 = arith.constant 0 : i32
    return %c0_i32, %c0_i32_0 : i32, i32
  }
  func.func @transform_1(%arg0: i32) -> (i32, i32) {
    %c0_i32 = arith.constant 0 : i32
    %c0_i32_0 = arith.constant 0 : i32
    %c0_i32_1 = arith.constant 0 : i32
    return %c0_i32, %c0_i32_0 : i32, i32
  }
  func.func @transform_2(%arg0: i32) -> (i32, i32) {
    %c0_i32 = arith.constant 0 : i32
    %c0_i32_0 = arith.constant 0 : i32
    %c0_i32_1 = arith.constant 0 : i32
    return %c0_i32, %c0_i32_0 : i32, i32
  }
  func.func @transform_3(%arg0: i32) -> (i32, i32) {
    %c0_i32 = arith.constant 0 : i32
    %c0_i32_0 = arith.constant 0 : i32
    %c0_i32_1 = arith.constant 0 : i32
    return %c0_i32, %c0_i32_0 : i32, i32
  }
  func.func @transform_4(%arg0: i32) -> (i32, i32) {
    %c0_i32 = arith.constant 0 : i32
    %c0_i32_0 = arith.constant 0 : i32
    %c0_i32_1 = arith.constant 0 : i32
    return %c0_i32, %c0_i32_0 : i32, i32
  }
  func.func @transform_5(%arg0: i32) -> (i32, i32) {
    %c0_i32 = arith.constant 0 : i32
    %c0_i32_0 = arith.constant 0 : i32
    %c0_i32_1 = arith.constant 0 : i32
    return %c0_i32, %c0_i32_0 : i32, i32
  }
  func.func @transform_6(%arg0: i32) -> (i32, i32) {
    %c0_i32 = arith.constant 0 : i32
    %c0_i32_0 = arith.constant 0 : i32
    %c0_i32_1 = arith.constant 0 : i32
    return %c0_i32, %c0_i32_0 : i32, i32
  }
  func.func @transform_7(%arg0: i32) -> (i32, i32) {
    %c0_i32 = arith.constant 0 : i32
    %c0_i32_0 = arith.constant 0 : i32
    %c0_i32_1 = arith.constant 0 : i32
    return %c0_i32, %c0_i32_0 : i32, i32
  }
  func.func @transform_8(%arg0: i32) -> (i32, i32) {
    %c0_i32 = arith.constant 0 : i32
    %c0_i32_0 = arith.constant 0 : i32
    %c0_i32_1 = arith.constant 0 : i32
    return %c0_i32, %c0_i32_0 : i32, i32
  }
}

</mosaic_0001>

<bundles_post_ra>
// kernel: lstm_model_forward.1
= control target key start
LH: loop header
LB: loop body
LE: loop exit
PB: predicated region body
PF: predicated region fallthrough
CT: control target
= control target key end

     0   :  { %vm49_vm0 = vcmask 130048   ;;  %v1188_v21 = vmov 0.0   ;;  %v172_v39 = vlaneseq  ;;  %vm181_vm10 = vcmask 523264   ;;  %s1651_s2 = inlined_call_operand.vmem [shape: f32[64,256], index: 2, kind: input, shape index: {}]   ;;  %s1652_s1 = inlined_call_operand.vmem [shape: f32[16,256], index: 1, kind: input, shape index: {}]   ;;  %s1653_s0 = inlined_call_operand.vmem [shape: f32[64,16], index: 0, kind: input, shape index: {}]   ;;  %s1654_s3 = inlined_call_operand.vmem [shape: f32[1,256], index: 3, kind: input, shape index: {}]   ;;  %s1655_s4 = inlined_call_operand.vmem [shape: f32[64,32], index: 4, kind: input, shape index: {}]   ;;  %s1656_s5 = inlined_call_operand.vmem [shape: f32[1,32], index: 5, kind: input, shape index: {}]   ;;  %s1657_s6 = inlined_call_operand.vmem [shape: f32[32,1], index: 6, kind: input, shape index: {}]   ;;  %s1658_s7 = inlined_call_operand.<no memory space> [shape: f32[1,1], index: 7, kind: input, shape index: {}]   ;;  %s1659_s8 = inlined_call_operand.vmem [shape: f32[8,1], index: 8, kind: output, shape index: {}]  }
   0x1   :  { %v1238_v0 = vld [vmem:[%s1651_s2 + $0x70] sm:$0xff]  ;;  %v1243_v1 = vld [vmem:[%s1651_s2 + $0x78] sm:$0xff]  ;;  %v1248_v2 = vld [vmem:[%s1651_s2 + $0x60] sm:$0xff] }
   0x2   :  { %193 = vmatpush.msra.mxu2 %v1238_v0  ;;  %213 = vmatpush.msra.mxu3 %v1243_v1  ;;  %v1255_v3 = vld [vmem:[%s1651_s2 + $0x68] sm:$0xff]  ;;  %v1260_v4 = vld [vmem:[%s1651_s2 + $0x50] sm:$0xff]  ;;  %v1265_v5 = vld [vmem:[%s1651_s2 + $0x58] sm:$0xff]  ;;  %v173_v41 = vand.u32 127, %v172_v39 }
   0x3   :  { %v1272_v6 = vld [vmem:[%s1651_s2 + $0x40] sm:$0xff]  ;;  %v1277_v7 = vld [vmem:[%s1651_s2 + $0x48] sm:$0xff]  ;;  %v1284_v8 = vld [vmem:[%s1651_s2 + $0x30] sm:$0xff] }
   0x4   :  { %194 = vmatpush.msra.mxu2 %v1248_v2  ;;  %214 = vmatpush.msra.mxu3 %v1255_v3  ;;  %v41_v9 = vld [vmem:[%s1652_s1 + $0x10] sm:$0xff]  ;;  %v42_v10 = vld [vmem:[%s1652_s1 + $0x18] sm:$0xff]  ;;  %v39_v12 = vld [vmem:[%s1652_s1] sm:$0xff]  ;;  %v1421_v46 = vadd.s32 128, %v173_v41 }
   0x5   :  { %v1295_v11 = vld [vmem:[%s1651_s2 + $0x38] sm:$0xff]  ;;  %88 = vmatpush.msra.mxu0 %v41_v9  ;;  %129 = vmatpush.msra.mxu1 %v42_v10  ;;  %v40_v13 = vld [vmem:[%s1652_s1 + $0x8] sm:$0xff]  ;;  %v31_v14 = vld [vmem:[%s1653_s0] sm:$0xff] }
   0x6   :  { %195 = vmatpush.msra.mxu2 %v1260_v4  ;;  %215 = vmatpush.msra.mxu3 %v1265_v5  ;;  %v1311_v15 = vld [vmem:[%s1651_s2 + $0x20] sm:$0xff]  ;;  %v1316_v16 = vld [vmem:[%s1651_s2 + $0x28] sm:$0xff]  ;;  %v1323_v17 = vld [vmem:[%s1651_s2 + $0x10] sm:$0xff]  ;;  %vm178_vm6 = vcmp.lt.s32.totalorder %v1421_v46, 192 }
   0x7   :  { %89 = vmatpush.msra.mxu0 %v39_v12  ;;  %130 = vmatpush.msra.mxu1 %v40_v13  ;;  %v1328_v18 = vld [vmem:[%s1651_s2 + $0x18] sm:$0xff]  ;;  %v1337_v19 = vld [vmem:[%s1651_s2] sm:$0xff]  ;;  %v1342_v20 = vld [vmem:[%s1651_s2 + $0x8] sm:$0xff] }
   0x8   :  { %196 = vmatpush.msra.mxu2 %v1272_v6  ;;  %216 = vmatpush.msra.mxu3 %v1277_v7  ;;  %v43_v22 = vld [vmem:[%s1654_s3] sm:$0x3]  ;;  %s1189_s3 = smov 64  }
   0x9   :  { %1040 = vmatmul.msk.f32.vlgmr.msra.gmra.mxu0 %vm49_vm0, %v31_v14  ;;  %1048 = vmatmul.msk.f32.vlgmr.msra.gmra.mxu1 %vm49_vm0, %v31_v14  ;;  %v1415_v23 = vperm.slane %v43_v22, 0  ;;  %v1417_v24 = vperm.slane %v43_v22, 1  ;;  %v32_v22 = vld [vmem:[%s1653_s0 + $0x8] sm:$0xff]  ;;  %v968_v46 = vld [vmem:[%s1655_s4 + $0x20] sm:$0xff] }
   0xa   :  { %197 = vmatpush.msra.mxu2 %v1284_v8  ;;  %217 = vmatpush.msra.mxu3 %v1295_v11 }
   0xb   :  { %605 = vmatpush.msrb.mxu1 %v1243_v1  ;;  %585 = vmatpush.msrb.mxu0 %v1238_v0 }
   0xc   :  { %198 = vmatpush.msra.mxu2 %v1311_v15  ;;  %218 = vmatpush.msra.mxu3 %v1316_v16 }
   0xd   :  { %606 = vmatpush.msrb.mxu1 %v1255_v3  ;;  %586 = vmatpush.msrb.mxu0 %v1248_v2 }
   0xe   :  { %199 = vmatpush.msra.mxu2 %v1323_v17  ;;  %219 = vmatpush.msra.mxu3 %v1328_v18 }
   0xf   :  { %607 = vmatpush.msrb.mxu1 %v1265_v5  ;;  %587 = vmatpush.msrb.mxu0 %v1260_v4 }
  0x10   :  { %200 = vmatpush.msra.mxu2 %v1337_v19  ;;  %220 = vmatpush.msra.mxu3 %v1342_v20 }
  0x11   :  { %201 = vmatmul.f32.vlgmr.msra.gmra.mxu2 %v1188_v21  ;;  %221 = vmatmul.f32.vlgmr.msra.gmra.mxu3 %v1188_v21 }
  0x12   :  { %291 = vmatpush.msrb.mxu2 %v1238_v0  ;;  %311 = vmatpush.msrb.mxu3 %v1243_v1 }
  0x13   :  { %608 = vmatpush.msrb.mxu1 %v1277_v7  ;;  %588 = vmatpush.msrb.mxu0 %v1272_v6 }
  0x14   :  { %292 = vmatpush.msrb.mxu2 %v1248_v2  ;;  %312 = vmatpush.msrb.mxu3 %v1255_v3 }
  0x15   :  { %609 = vmatpush.msrb.mxu1 %v1295_v11  ;;  %589 = vmatpush.msrb.mxu0 %v1284_v8 }
  0x16   :  { %293 = vmatpush.msrb.mxu2 %v1260_v4  ;;  %313 = vmatpush.msrb.mxu3 %v1265_v5 }
  0x17   :  { %610 = vmatpush.msrb.mxu1 %v1316_v16  ;;  %590 = vmatpush.msrb.mxu0 %v1311_v15 }
  0x18   :  { %294 = vmatpush.msrb.mxu2 %v1272_v6  ;;  %314 = vmatpush.msrb.mxu3 %v1277_v7 }
  0x19   :  { %611 = vmatpush.msrb.mxu1 %v1328_v18  ;;  %591 = vmatpush.msrb.mxu0 %v1323_v17 }
  0x1a   :  { %295 = vmatpush.msrb.mxu2 %v1284_v8  ;;  %315 = vmatpush.msrb.mxu3 %v1295_v11 }
  0x1b   :  { %612 = vmatpush.msrb.mxu1 %v1342_v20  ;;  %592 = vmatpush.msrb.mxu0 %v1337_v19 }
  0x1c   :  { %296 = vmatpush.msrb.mxu2 %v1311_v15  ;;  %316 = vmatpush.msrb.mxu3 %v1316_v16 }
  0x1d   :  { %781 = vmatpush.msra.mxu0 %v1238_v0  ;;  %801 = vmatpush.msra.mxu1 %v1243_v1 }
  0x1e   :  { %297 = vmatpush.msrb.mxu2 %v1323_v17  ;;  %317 = vmatpush.msrb.mxu3 %v1328_v18 }
  0x1f   :  { %782 = vmatpush.msra.mxu0 %v1248_v2  ;;  %802 = vmatpush.msra.mxu1 %v1255_v3 }
  0x20   :  { %298 = vmatpush.msrb.mxu2 %v1337_v19  ;;  %318 = vmatpush.msrb.mxu3 %v1342_v20 }
  0x21   :  { %783 = vmatpush.msra.mxu0 %v1260_v4  ;;  %803 = vmatpush.msra.mxu1 %v1265_v5 }
  0x22   :  { %389 = vmatpush.msra.mxu2 %v1238_v0  ;;  %409 = vmatpush.msra.mxu3 %v1243_v1 }
  0x23   :  { %784 = vmatpush.msra.mxu0 %v1272_v6  ;;  %804 = vmatpush.msra.mxu1 %v1277_v7 }
  0x24   :  { %390 = vmatpush.msra.mxu2 %v1248_v2  ;;  %410 = vmatpush.msra.mxu3 %v1255_v3 }
  0x25   :  { %785 = vmatpush.msra.mxu0 %v1284_v8  ;;  %805 = vmatpush.msra.mxu1 %v1295_v11 }
  0x26   :  { %391 = vmatpush.msra.mxu2 %v1260_v4  ;;  %411 = vmatpush.msra.mxu3 %v1265_v5 }
  0x27   :  { %786 = vmatpush.msra.mxu0 %v1311_v15  ;;  %806 = vmatpush.msra.mxu1 %v1316_v16 }
  0x28   :  { %392 = vmatpush.msra.mxu2 %v1272_v6  ;;  %412 = vmatpush.msra.mxu3 %v1277_v7 }
  0x29   :  { %787 = vmatpush.msra.mxu0 %v1323_v17  ;;  %807 = vmatpush.msra.mxu1 %v1328_v18 }
  0x2a   :  { %393 = vmatpush.msra.mxu2 %v1284_v8  ;;  %413 = vmatpush.msra.mxu3 %v1295_v11 }
  0x2b   :  { %788 = vmatpush.msra.mxu0 %v1337_v19  ;;  %808 = vmatpush.msra.mxu1 %v1342_v20 }
  0x2c   :  { %394 = vmatpush.msra.mxu2 %v1311_v15  ;;  %414 = vmatpush.msra.mxu3 %v1316_v16 }
  0x2d   :  { %1041 = vmatmul.msk.f32.gmra.mxu0 %vm49_vm0, %v32_v22  ;;  %1049 = vmatmul.msk.f32.gmra.mxu1 %vm49_vm0, %v32_v22  ;;  %v33_v22 = vld [vmem:[%s1653_s0 + $0x10] sm:$0xff] }
  0x2e   :  { %395 = vmatpush.msra.mxu2 %v1323_v17  ;;  %415 = vmatpush.msra.mxu3 %v1328_v18 }
  0x30   :  { %396 = vmatpush.msra.mxu2 %v1337_v19  ;;  %416 = vmatpush.msra.mxu3 %v1342_v20 }
  0x35   :  { %1042 = vmatmul.msk.f32.gmra.mxu0 %vm49_vm0, %v33_v22  ;;  %1050 = vmatmul.msk.f32.gmra.mxu1 %vm49_vm0, %v33_v22  ;;  %v34_v22 = vld [vmem:[%s1653_s0 + $0x18] sm:$0xff] }
  0x3d   :  { %1043 = vmatmul.msk.f32.gmra.mxu0 %vm49_vm0, %v34_v22  ;;  %1051 = vmatmul.msk.f32.gmra.mxu1 %vm49_vm0, %v34_v22 }
  0x86   :  { %v91_v25 = vpop.f32.mrf.mxu0  ;;  %v132_v26 = vpop.f32.mrf.mxu1 }
  0x87   :  { %v92_v27 = vadd.f32 %v91_v25, %v1415_v23  ;;  %v133_v28 = vadd.f32 %v132_v26, %v1417_v24 }
  0x94   :  { %v202_v29 = vpop.f32.mrf.mxu2  ;;  %v222_v30 = vpop.f32.mrf.mxu3 }
  0x95   :  { %v225_v31 = vadd.f32 %v202_v29, %v92_v27  ;;  %v226_v32 = vadd.f32 %v222_v30, %v133_v28 }
  0x97   :  { %v1056_v33 = vmul.f32 -1.442695, %v225_v31  ;;  %v1057_v34 = vmul.f32 -1.442695, %v226_v32 }
  0x99   :  { %1092 = vpow2.f32 %v1056_v33 }
  0x9a   :  { %1094 = vpow2.f32 %v1057_v34 }
  0x9f   :  { %v1093_v35 = vpop.eup %1092 }
  0xa0   :  { %v1095_v36 = vpop.eup %1094  ;;  %v235_v37 = vadd.f32 1.0, %v1093_v35 }
  0xa1   :  { %v236_v38 = vadd.f32 1.0, %v1095_v36 }
  0xa2   :  { %1096 = vrcp.f32 %v235_v37  ;;  %v248_v47 = vand.u32 2147483648, %v235_v37  ;;  %v246_v50 = vand.u32 2147483647, %v235_v37  ;;  %vm242_vm3 = vweird.f32 %v235_v37 }
  0xa3   :  { %1098 = vrcp.f32 %v236_v38  ;;  %v263_v51 = vand.u32 2147483648, %v236_v38  ;;  %v261_v53 = vand.u32 2147483647, %v236_v38  ;;  %vm257_vm5 = vweird.f32 %v236_v38 }
  0xa4   :  { %1100 = vtanh.f32 %v226_v32  ;;  %v249_v55 = vor.u32 1.1754944e-38, %v248_v47  ;;  %vm247_vm7 = vcmp.eq.f32.partialorder %v246_v50, 8.507059e+37 }
  0xa5   :  { %v264_v58 = vor.u32 1.1754944e-38, %v263_v51  ;;  %vm262_vm9 = vcmp.eq.f32.partialorder %v261_v53, 8.507059e+37 }
  0xa8   :  { %v1097_v40 = vpop.eup %1096 }
  0xa9   :  { %v1099_v42 = vpop.eup %1098  ;;  %v238_v43 = vmul.f32 %v1097_v40, %v235_v37  ;;  %vm243_vm1 = vweird.f32 %v1097_v40 }
  0xaa   :  { %v253_v44 = vmul.f32 %v1099_v42, %v236_v38  ;;  %vm258_vm2 = vweird.f32 %v1099_v42  ;;  %vm244_vm4 = vmor %vm242_vm3, %vm243_vm1  ;;  %v1101_v59 = vpop.eup %1100  ;;  %v94_v26 = vpop.f32.mrf.mxu0 }
  0xab   :  { %v239_v45 = vsub.f32 1.0, %v238_v43  ;;  %vm259_vm8 = vmor %vm257_vm5, %vm258_vm2  ;;  %v135_v27 = vpop.f32.mrf.mxu1  ;;  %v95_v28 = vadd.f32 %v94_v26, %v1415_v23 }
  0xac   :  { %v254_v48 = vsub.f32 1.0, %v253_v44  ;;  %v136_v29 = vadd.f32 %v135_v27, %v1417_v24 }
  0xad   :  { %v240_v49 = vmul.f32 %v1097_v40, %v239_v45 }
  0xae   :  { %v255_v52 = vmul.f32 %v1099_v42, %v254_v48 }
  0xaf   :  { %v241_v54 = vadd.f32 %v1097_v40, %v240_v49 }
  0xb0   :  { %v256_v56 = vadd.f32 %v1099_v42, %v255_v52 }
  0xb1   :  { %v245_v57 = vsel %vm244_vm4, %v1097_v40, %v241_v54 }
  0xb2   :  { %v250_v60 = vsel %vm247_vm7, %v249_v55, %v245_v57  ;;  %v260_v61 = vsel %vm259_vm8, %v1099_v42, %v256_v56 }
  0xb3   :  { %v265_v62 = vsel %vm262_vm9, %v264_v58, %v260_v61  ;;  %v269_v10 = vmul.f32 0.0, %v250_v60  ;;  %v138_v26 = vpop.f32.mrf.mxu1 }
  0xb4   :  { %v268_v63 = vsel %vm178_vm6, %v1101_v59, %v265_v62 }
  0xb5   :  { %v270_v9 = vmul.f32 %v268_v63, %v250_v60 }
  0xb7   :  { %272 = vrot.lane.b32.xlu0 %v270_v9, %s1189_s3 }
 0x129   :  { %v273_v12 = vpop.permute.xlu0 %272 }
 0x12a   :  { %v1427_v13 = vadd.f32 %v273_v12, %v269_v10 }
 0x12c   :  { %1102 = vtanh.f32 %v1427_v13 }
 0x132   :  { %v1103_v14 = vpop.eup %1102 }
 0x133   :  { %v277_v21 = vmul.f32 %v1103_v14, %v268_v63 }
 0x135   :  { %279 = vrot.lane.b32.xlu0 %v277_v21, %s1189_s3 }
 0x1a7   :  { %v280_v25 = vpop.permute.xlu0 %279 }
 0x1a8   :  { %1058 = vmatmul.msk.f32.vlgmr.msrb.gmra.mxu2 %vm181_vm10, %v280_v25  ;;  %1059 = vmatmul.msk.f32.vlgmr.msrb.gmra.mxu3 %vm181_vm10, %v280_v25 }
 0x1a9   :  { %487 = vmatpush.msrb.mxu2 %v1238_v0  ;;  %507 = vmatpush.msrb.mxu3 %v1243_v1 }
 0x1ab   :  { %488 = vmatpush.msrb.mxu2 %v1248_v2  ;;  %508 = vmatpush.msrb.mxu3 %v1255_v3 }
 0x1ad   :  { %489 = vmatpush.msrb.mxu2 %v1260_v4  ;;  %509 = vmatpush.msrb.mxu3 %v1265_v5 }
 0x1af   :  { %490 = vmatpush.msrb.mxu2 %v1272_v6  ;;  %510 = vmatpush.msrb.mxu3 %v1277_v7 }
 0x1b1   :  { %491 = vmatpush.msrb.mxu2 %v1284_v8  ;;  %511 = vmatpush.msrb.mxu3 %v1295_v11 }
 0x1b3   :  { %492 = vmatpush.msrb.mxu2 %v1311_v15  ;;  %512 = vmatpush.msrb.mxu3 %v1316_v16 }
 0x1b5   :  { %493 = vmatpush.msrb.mxu2 %v1323_v17  ;;  %513 = vmatpush.msrb.mxu3 %v1328_v18 }
 0x1b7   :  { %494 = vmatpush.msrb.mxu2 %v1337_v19  ;;  %514 = vmatpush.msrb.mxu3 %v1342_v20 }
 0x22b   :  { %v300_v30 = vpop.f32.mrf.mxu2  ;;  %v320_v31 = vpop.f32.mrf.mxu3 }
 0x22c   :  { %v323_v32 = vadd.f32 %v300_v30, %v95_v28  ;;  %v324_v33 = vadd.f32 %v320_v31, %v136_v29  ;;  %v139_v28 = vadd.f32 %v138_v26, %v1417_v24 }
 0x22e   :  { %v1060_v34 = vmul.f32 -1.442695, %v323_v32  ;;  %v1061_v35 = vmul.f32 -1.442695, %v324_v33 }
 0x230   :  { %1104 = vpow2.f32 %v1060_v34 }
 0x231   :  { %1106 = vpow2.f32 %v1061_v35 }
 0x236   :  { %v1105_v36 = vpop.eup %1104 }
 0x237   :  { %v1107_v37 = vpop.eup %1106  ;;  %v333_v38 = vadd.f32 1.0, %v1105_v36 }
 0x238   :  { %v334_v39 = vadd.f32 1.0, %v1107_v37 }
 0x239   :  { %1108 = vrcp.f32 %v333_v38  ;;  %v346_v45 = vand.u32 2147483648, %v333_v38  ;;  %v344_v49 = vand.u32 2147483647, %v333_v38  ;;  %vm340_vm13 = vweird.f32 %v333_v38 }
 0x23a   :  { %1110 = vrcp.f32 %v334_v39  ;;  %v361_v50 = vand.u32 2147483648, %v334_v39  ;;  %v359_v52 = vand.u32 2147483647, %v334_v39  ;;  %vm355_vm15 = vweird.f32 %v334_v39 }
 0x23b   :  { %1112 = vtanh.f32 %v324_v33  ;;  %v347_v54 = vor.u32 1.1754944e-38, %v346_v45  ;;  %vm345_vm1 = vcmp.eq.f32.partialorder %v344_v49, 8.507059e+37 }
 0x23c   :  { %v362_v57 = vor.u32 1.1754944e-38, %v361_v50  ;;  %vm360_vm3 = vcmp.eq.f32.partialorder %v359_v52, 8.507059e+37 }
 0x23f   :  { %v1109_v40 = vpop.eup %1108 }
 0x240   :  { %v1111_v41 = vpop.eup %1110  ;;  %v336_v42 = vmul.f32 %v1109_v40, %v333_v38  ;;  %vm341_vm11 = vweird.f32 %v1109_v40 }
 0x241   :  { %v351_v43 = vmul.f32 %v1111_v41, %v334_v39  ;;  %vm356_vm12 = vweird.f32 %v1111_v41  ;;  %vm342_vm14 = vmor %vm340_vm13, %vm341_vm11  ;;  %v1113_v58 = vpop.eup %1112 }
 0x242   :  { %v337_v44 = vsub.f32 1.0, %v336_v42  ;;  %vm357_vm2 = vmor %vm355_vm15, %vm356_vm12 }
 0x243   :  { %v352_v47 = vsub.f32 1.0, %v351_v43 }
 0x244   :  { %v338_v48 = vmul.f32 %v1109_v40, %v337_v44 }
 0x245   :  { %v353_v51 = vmul.f32 %v1111_v41, %v352_v47 }
 0x246   :  { %v339_v53 = vadd.f32 %v1109_v40, %v338_v48 }
 0x247   :  { %v354_v55 = vadd.f32 %v1111_v41, %v353_v51 }
 0x248   :  { %v343_v56 = vsel %vm342_vm14, %v1109_v40, %v339_v53 }
 0x249   :  { %v348_v59 = vsel %vm345_vm1, %v347_v54, %v343_v56  ;;  %v358_v60 = vsel %vm357_vm2, %v1111_v41, %v354_v55 }
 0x24a   :  { %v363_v61 = vsel %vm360_vm3, %v362_v57, %v358_v60  ;;  %v367_v9 = vmul.f32 %v348_v59, %v1427_v13  ;;  %v97_v13 = vpop.f32.mrf.mxu0 }
 0x24b   :  { %v366_v62 = vsel %vm178_vm6, %v1113_v58, %v363_v61  ;;  %v98_v27 = vadd.f32 %v97_v13, %v1415_v23 }
 0x24c   :  { %v368_v63 = vmul.f32 %v366_v62, %v348_v59 }
 0x24e   :  { %370 = vrot.lane.b32.xlu1 %v368_v63, %s1189_s3 }
 0x2c0   :  { %v371_v10 = vpop.permute.xlu1 %370 }
 0x2c1   :  { %v1460_v12 = vadd.f32 %v371_v10, %v367_v9 }
 0x2c3   :  { %1114 = vtanh.f32 %v1460_v12 }
 0x2c9   :  { %v1115_v14 = vpop.eup %1114 }
 0x2ca   :  { %v375_v21 = vmul.f32 %v1115_v14, %v366_v62 }
 0x2cc   :  { %377 = vrot.lane.b32.xlu1 %v375_v21, %s1189_s3 }
 0x33e   :  { %v378_v25 = vpop.permute.xlu1 %377 }
 0x33f   :  { %1062 = vmatmul.msk.f32.vlgmr.msra.gmra.mxu2 %vm181_vm10, %v378_v25  ;;  %1063 = vmatmul.msk.f32.vlgmr.msra.gmra.mxu3 %vm181_vm10, %v378_v25 }
 0x340   :  { %683 = vmatpush.msra.mxu2 %v1238_v0  ;;  %703 = vmatpush.msra.mxu3 %v1243_v1 }
 0x342   :  { %684 = vmatpush.msra.mxu2 %v1248_v2  ;;  %704 = vmatpush.msra.mxu3 %v1255_v3 }
 0x344   :  { %685 = vmatpush.msra.mxu2 %v1260_v4  ;;  %705 = vmatpush.msra.mxu3 %v1265_v5 }
 0x346   :  { %686 = vmatpush.msra.mxu2 %v1272_v6  ;;  %706 = vmatpush.msra.mxu3 %v1277_v7 }
 0x348   :  { %687 = vmatpush.msra.mxu2 %v1284_v8  ;;  %707 = vmatpush.msra.mxu3 %v1295_v11 }
 0x34a   :  { %688 = vmatpush.msra.mxu2 %v1311_v15  ;;  %708 = vmatpush.msra.mxu3 %v1316_v16 }
 0x34c   :  { %689 = vmatpush.msra.mxu2 %v1323_v17  ;;  %709 = vmatpush.msra.mxu3 %v1328_v18 }
 0x34e   :  { %690 = vmatpush.msra.mxu2 %v1337_v19  ;;  %710 = vmatpush.msra.mxu3 %v1342_v20 }
 0x3c2   :  { %v398_v29 = vpop.f32.mrf.mxu2  ;;  %v418_v30 = vpop.f32.mrf.mxu3 }
 0x3c3   :  { %v421_v31 = vadd.f32 %v398_v29, %v98_v27  ;;  %v422_v32 = vadd.f32 %v418_v30, %v139_v28 }
 0x3c5   :  { %v1064_v33 = vmul.f32 -1.442695, %v421_v31  ;;  %v1065_v34 = vmul.f32 -1.442695, %v422_v32 }
 0x3c7   :  { %1116 = vpow2.f32 %v1064_v33 }
 0x3c8   :  { %1118 = vpow2.f32 %v1065_v34 }
 0x3cd   :  { %v1117_v35 = vpop.eup %1116 }
 0x3ce   :  { %v1119_v36 = vpop.eup %1118  ;;  %v431_v37 = vadd.f32 1.0, %v1117_v35 }
 0x3cf   :  { %v432_v38 = vadd.f32 1.0, %v1119_v36 }
 0x3d0   :  { %1120 = vrcp.f32 %v431_v37  ;;  %v444_v44 = vand.u32 2147483648, %v431_v37  ;;  %v442_v48 = vand.u32 2147483647, %v431_v37  ;;  %vm438_vm7 = vweird.f32 %v431_v37 }
 0x3d1   :  { %1122 = vrcp.f32 %v432_v38  ;;  %v459_v49 = vand.u32 2147483648, %v432_v38  ;;  %v457_v51 = vand.u32 2147483647, %v432_v38  ;;  %vm453_vm9 = vweird.f32 %v432_v38 }
 0x3d2   :  { %1124 = vtanh.f32 %v422_v32  ;;  %v445_v53 = vor.u32 1.1754944e-38, %v444_v44  ;;  %vm443_vm11 = vcmp.eq.f32.partialorder %v442_v48, 8.507059e+37  ;;  %v37_v48 = vld [vmem:[%s1653_s0 + $0x30] sm:$0xff] }
 0x3d3   :  { %v460_v56 = vor.u32 1.1754944e-38, %v459_v49  ;;  %vm458_vm13 = vcmp.eq.f32.partialorder %v457_v51, 8.507059e+37 }
 0x3d6   :  { %v1121_v39 = vpop.eup %1120 }
 0x3d7   :  { %v1123_v40 = vpop.eup %1122  ;;  %v434_v41 = vmul.f32 %v1121_v39, %v431_v37  ;;  %vm439_vm4 = vweird.f32 %v1121_v39 }
 0x3d8   :  { %v449_v42 = vmul.f32 %v1123_v40, %v432_v38  ;;  %vm454_vm5 = vweird.f32 %v1123_v40  ;;  %vm440_vm8 = vmor %vm438_vm7, %vm439_vm4  ;;  %v1125_v57 = vpop.eup %1124 }
 0x3d9   :  { %v435_v43 = vsub.f32 1.0, %v434_v41  ;;  %vm455_vm12 = vmor %vm453_vm9, %vm454_vm5 }
 0x3da   :  { %v450_v45 = vsub.f32 1.0, %v449_v42 }
 0x3db   :  { %v436_v47 = vmul.f32 %v1121_v39, %v435_v43 }
 0x3dc   :  { %v451_v50 = vmul.f32 %v1123_v40, %v450_v45  ;;  %v35_v45 = vld [vmem:[%s1653_s0 + $0x20] sm:$0xff] }
 0x3dd   :  { %v437_v52 = vadd.f32 %v1121_v39, %v436_v47  ;;  %1044 = vmatmul.msk.f32.gmra.mxu0 %vm49_vm0, %v35_v45  ;;  %1052 = vmatmul.msk.f32.gmra.mxu1 %vm49_vm0, %v35_v45  ;;  %v36_v47 = vld [vmem:[%s1653_s0 + $0x28] sm:$0xff] }
 0x3de   :  { %v452_v54 = vadd.f32 %v1123_v40, %v451_v50 }
 0x3df   :  { %v441_v55 = vsel %vm440_vm8, %v1121_v39, %v437_v52  ;;  %v38_v52 = vld [vmem:[%s1653_s0 + $0x38] sm:$0xff] }
 0x3e0   :  { %v446_v58 = vsel %vm443_vm11, %v445_v53, %v441_v55  ;;  %v456_v59 = vsel %vm455_vm12, %v1123_v40, %v452_v54 }
 0x3e1   :  { %v461_v60 = vsel %vm458_vm13, %v460_v56, %v456_v59  ;;  %v465_v63 = vmul.f32 %v446_v58, %v1460_v12 }
 0x3e2   :  { %v464_v61 = vsel %vm178_vm6, %v1125_v57, %v461_v60 }
 0x3e3   :  { %v466_v62 = vmul.f32 %v464_v61, %v446_v58 }
 0x3e5   :  { %468 = vrot.lane.b32.xlu2 %v466_v62, %s1189_s3  ;;  %1045 = vmatmul.msk.f32.gmra.mxu0 %vm49_vm0, %v36_v47 }
 0x3e6   :  { %1053 = vmatmul.msk.f32.gmra.mxu1 %vm49_vm0, %v36_v47 }
 0x3ed   :  { %1046 = vmatmul.msk.f32.gmra.mxu0 %vm49_vm0, %v37_v48 }
 0x3ee   :  { %1054 = vmatmul.msk.f32.gmra.mxu1 %vm49_vm0, %v37_v48 }
 0x3f5   :  { %1047 = vmatmul.msk.f32.gmra.mxu0 %vm49_vm0, %v38_v52 }
 0x3f6   :  { %1055 = vmatmul.msk.f32.gmra.mxu1 %vm49_vm0, %v38_v52 }
 0x43f   :  { %v469_v9 = vpop.permute.xlu2 %468 }
 0x440   :  { %v1493_v10 = vadd.f32 %v469_v9, %v465_v63 }
 0x442   :  { %1126 = vtanh.f32 %v1493_v10 }
 0x448   :  { %v1127_v14 = vpop.eup %1126 }
 0x449   :  { %v473_v21 = vmul.f32 %v1127_v14, %v464_v61 }
 0x44b   :  { %475 = vrot.lane.b32.xlu2 %v473_v21, %s1189_s3 }
 0x4a5   :  { %v476_v25 = vpop.permute.xlu2 %475 }
 0x4a6   :  { %1066 = vmatmul.msk.f32.vlgmr.msrb.gmra.mxu2 %vm181_vm10, %v476_v25  ;;  %1067 = vmatmul.msk.f32.vlgmr.msrb.gmra.mxu3 %vm181_vm10, %v476_v25 }
 0x4a7   :  { %879 = vmatpush.msrb.mxu2 %v1238_v0  ;;  %899 = vmatpush.msrb.mxu3 %v1243_v1  ;;  %v100_v0 = vpop.f32.mrf.mxu0  ;;  %v141_v1 = vpop.f32.mrf.mxu1 }
 0x4a9   :  { %880 = vmatpush.msrb.mxu2 %v1248_v2  ;;  %900 = vmatpush.msrb.mxu3 %v1255_v3  ;;  %v101_v2 = vadd.f32 %v100_v0, %v1415_v23  ;;  %v142_v3 = vadd.f32 %v141_v1, %v1417_v24 }
 0x4ab   :  { %881 = vmatpush.msrb.mxu2 %v1260_v4  ;;  %901 = vmatpush.msrb.mxu3 %v1265_v5 }
 0x4ad   :  { %882 = vmatpush.msrb.mxu2 %v1272_v6  ;;  %902 = vmatpush.msrb.mxu3 %v1277_v7 }
 0x4af   :  { %883 = vmatpush.msrb.mxu2 %v1284_v8  ;;  %903 = vmatpush.msrb.mxu3 %v1295_v11  ;;  %v103_v56 = vpop.f32.mrf.mxu0  ;;  %v144_v57 = vpop.f32.mrf.mxu1 }
 0x4b0   :  { %v104_v9 = vadd.f32 %v103_v56, %v1415_v23 }
 0x4b1   :  { %884 = vmatpush.msrb.mxu2 %v1311_v15  ;;  %904 = vmatpush.msrb.mxu3 %v1316_v16 }
 0x4b3   :  { %885 = vmatpush.msrb.mxu2 %v1323_v17  ;;  %905 = vmatpush.msrb.mxu3 %v1328_v18 }
 0x4b5   :  { %886 = vmatpush.msrb.mxu2 %v1337_v19  ;;  %906 = vmatpush.msrb.mxu3 %v1342_v20 }
 0x4b7   :  { %v1552_v58 = vpop.f32.mrf.mxu0  ;;  %v1554_v59 = vpop.f32.mrf.mxu1 }
 0x4bf   :  { %v1556_v60 = vpop.f32.mrf.mxu0  ;;  %v1558_v61 = vpop.f32.mrf.mxu1 }
 0x4c7   :  { %v1560_v62 = vpop.f32.mrf.mxu0  ;;  %v1562_v63 = vpop.f32.mrf.mxu1 }
 0x529   :  { %v496_v4 = vpop.f32.mrf.mxu2  ;;  %v516_v5 = vpop.f32.mrf.mxu3 }
 0x52a   :  { %v519_v6 = vadd.f32 %v496_v4, %v101_v2  ;;  %v520_v7 = vadd.f32 %v516_v5, %v142_v3 }
 0x52c   :  { %v1068_v8 = vmul.f32 -1.442695, %v519_v6  ;;  %v1069_v11 = vmul.f32 -1.442695, %v520_v7 }
 0x52e   :  { %1128 = vpow2.f32 %v1068_v8 }
 0x52f   :  { %1130 = vpow2.f32 %v1069_v11 }
 0x534   :  { %v1129_v15 = vpop.eup %1128 }
 0x535   :  { %v1131_v16 = vpop.eup %1130  ;;  %v529_v17 = vadd.f32 1.0, %v1129_v15 }
 0x536   :  { %v530_v18 = vadd.f32 1.0, %v1131_v16 }
 0x537   :  { %1132 = vrcp.f32 %v529_v17  ;;  %v542_v28 = vand.u32 2147483648, %v529_v17  ;;  %v540_v30 = vand.u32 2147483647, %v529_v17  ;;  %vm536_vm1 = vweird.f32 %v529_v17 }
 0x538   :  { %1134 = vrcp.f32 %v530_v18  ;;  %v557_v31 = vand.u32 2147483648, %v530_v18  ;;  %v555_v33 = vand.u32 2147483647, %v530_v18  ;;  %vm551_vm3 = vweird.f32 %v530_v18 }
 0x539   :  { %1136 = vtanh.f32 %v520_v7  ;;  %v543_v35 = vor.u32 1.1754944e-38, %v542_v28  ;;  %vm541_vm4 = vcmp.eq.f32.partialorder %v540_v30, 8.507059e+37 }
 0x53a   :  { %v558_v38 = vor.u32 1.1754944e-38, %v557_v31  ;;  %vm556_vm7 = vcmp.eq.f32.partialorder %v555_v33, 8.507059e+37 }
 0x53d   :  { %v1133_v19 = vpop.eup %1132 }
 0x53e   :  { %v1135_v20 = vpop.eup %1134  ;;  %v532_v12 = vmul.f32 %v1133_v19, %v529_v17  ;;  %vm537_vm14 = vweird.f32 %v1133_v19 }
 0x53f   :  { %v547_v13 = vmul.f32 %v1135_v20, %v530_v18  ;;  %vm552_vm15 = vweird.f32 %v1135_v20  ;;  %vm538_vm2 = vmor %vm536_vm1, %vm537_vm14  ;;  %v1137_v39 = vpop.eup %1136 }
 0x540   :  { %v533_v26 = vsub.f32 1.0, %v532_v12  ;;  %vm553_vm5 = vmor %vm551_vm3, %vm552_vm15 }
 0x541   :  { %v548_v27 = vsub.f32 1.0, %v547_v13 }
 0x542   :  { %v534_v29 = vmul.f32 %v1133_v19, %v533_v26 }
 0x543   :  { %v549_v32 = vmul.f32 %v1135_v20, %v548_v27 }
 0x544   :  { %v535_v34 = vadd.f32 %v1133_v19, %v534_v29 }
 0x545   :  { %v550_v36 = vadd.f32 %v1135_v20, %v549_v32 }
 0x546   :  { %v539_v37 = vsel %vm538_vm2, %v1133_v19, %v535_v34 }
 0x547   :  { %v544_v40 = vsel %vm541_vm4, %v543_v35, %v539_v37  ;;  %v554_v41 = vsel %vm553_vm5, %v1135_v20, %v550_v36 }
 0x548   :  { %v559_v42 = vsel %vm556_vm7, %v558_v38, %v554_v41  ;;  %v563_v49 = vmul.f32 %v544_v40, %v1493_v10  ;;  %v145_v10 = vadd.f32 %v144_v57, %v1417_v24 }
 0x549   :  { %v562_v43 = vsel %vm178_vm6, %v1137_v39, %v559_v42 }
 0x54a   :  { %v564_v44 = vmul.f32 %v562_v43, %v544_v40 }
 0x54c   :  { %566 = vrot.lane.b32.xlu0 %v564_v44, %s1189_s3  ;;  %v148_v44 = vadd.f32 %v1554_v59, %v1417_v24 }
 0x5be   :  { %v567_v50 = vpop.permute.xlu0 %566 }
 0x5bf   :  { %v1541_v51 = vadd.f32 %v567_v50, %v563_v49 }
 0x5c1   :  { %1138 = vtanh.f32 %v1541_v51 }
 0x5c7   :  { %v1139_v53 = vpop.eup %1138 }
 0x5c8   :  { %v571_v54 = vmul.f32 %v1139_v53, %v562_v43  ;;  %v107_v43 = vadd.f32 %v1552_v58, %v1415_v23 }
 0x5ca   :  { %573 = vrot.lane.b32.xlu1 %v571_v54, %s1189_s3 }
 0x63c   :  { %v574_v55 = vpop.permute.xlu1 %573 }
 0x63d   :  { %1070 = vmatmul.msk.f32.vlgmr.msrb.gmra.mxu0 %vm181_vm10, %v574_v55  ;;  %1071 = vmatmul.msk.f32.vlgmr.msrb.gmra.mxu1 %vm181_vm10, %v574_v55 }
 0x6ba   :  { %v594_v14 = vpop.f32.mrf.mxu0  ;;  %v614_v21 = vpop.f32.mrf.mxu1 }
 0x6bb   :  { %v617_v22 = vadd.f32 %v594_v14, %v104_v9  ;;  %v618_v25 = vadd.f32 %v614_v21, %v145_v10 }
 0x6bd   :  { %v1072_v0 = vmul.f32 -1.442695, %v617_v22  ;;  %v1073_v1 = vmul.f32 -1.442695, %v618_v25 }
 0x6bf   :  { %1140 = vpow2.f32 %v1072_v0 }
 0x6c0   :  { %1142 = vpow2.f32 %v1073_v1 }
 0x6c5   :  { %v1141_v2 = vpop.eup %1140 }
 0x6c6   :  { %v1143_v3 = vpop.eup %1142  ;;  %v627_v4 = vadd.f32 1.0, %v1141_v2 }
 0x6c7   :  { %v628_v5 = vadd.f32 1.0, %v1143_v3 }
 0x6c8   :  { %1144 = vrcp.f32 %v627_v4  ;;  %v640_v17 = vand.u32 2147483648, %v627_v4  ;;  %v638_v19 = vand.u32 2147483647, %v627_v4  ;;  %vm634_vm9 = vweird.f32 %v627_v4 }
 0x6c9   :  { %1146 = vrcp.f32 %v628_v5  ;;  %v655_v20 = vand.u32 2147483648, %v628_v5  ;;  %v653_v13 = vand.u32 2147483647, %v628_v5  ;;  %vm649_vm12 = vweird.f32 %v628_v5 }
 0x6ca   :  { %1148 = vtanh.f32 %v618_v25  ;;  %v641_v27 = vor.u32 1.1754944e-38, %v640_v17  ;;  %vm639_vm13 = vcmp.eq.f32.partialorder %v638_v19, 8.507059e+37 }
 0x6cb   :  { %v656_v30 = vor.u32 1.1754944e-38, %v655_v20  ;;  %vm654_vm15 = vcmp.eq.f32.partialorder %v653_v13, 8.507059e+37 }
 0x6ce   :  { %v1145_v6 = vpop.eup %1144 }
 0x6cf   :  { %v1147_v7 = vpop.eup %1146  ;;  %v630_v8 = vmul.f32 %v1145_v6, %v627_v4  ;;  %vm635_vm0 = vweird.f32 %v1145_v6 }
 0x6d0   :  { %v645_v11 = vmul.f32 %v1147_v7, %v628_v5  ;;  %vm650_vm8 = vweird.f32 %v1147_v7  ;;  %vm636_vm11 = vmor %vm634_vm9, %vm635_vm0  ;;  %v1149_v31 = vpop.eup %1148 }
 0x6d1   :  { %v631_v15 = vsub.f32 1.0, %v630_v8  ;;  %vm651_vm14 = vmor %vm649_vm12, %vm650_vm8 }
 0x6d2   :  { %v646_v16 = vsub.f32 1.0, %v645_v11 }
 0x6d3   :  { %v632_v18 = vmul.f32 %v1145_v6, %v631_v15 }
 0x6d4   :  { %v647_v12 = vmul.f32 %v1147_v7, %v646_v16 }
 0x6d5   :  { %v633_v26 = vadd.f32 %v1145_v6, %v632_v18 }
 0x6d6   :  { %v648_v28 = vadd.f32 %v1147_v7, %v647_v12 }
 0x6d7   :  { %v637_v29 = vsel %vm636_vm11, %v1145_v6, %v633_v26 }
 0x6d8   :  { %v642_v32 = vsel %vm639_vm13, %v641_v27, %v637_v29  ;;  %v652_v33 = vsel %vm651_vm14, %v1147_v7, %v648_v28  ;;  %v110_v27 = vadd.f32 %v1556_v60, %v1415_v23  ;;  %v151_v28 = vadd.f32 %v1558_v61, %v1417_v24 }
 0x6d9   :  { %v657_v34 = vsel %vm654_vm15, %v656_v30, %v652_v33  ;;  %v661_v37 = vmul.f32 %v642_v32, %v1541_v51 }
 0x6da   :  { %v660_v35 = vsel %vm178_vm6, %v1149_v31, %v657_v34 }
 0x6db   :  { %v662_v36 = vmul.f32 %v660_v35, %v642_v32 }
 0x6dd   :  { %664 = vrot.lane.b32.xlu2 %v662_v36, %s1189_s3 }
 0x737   :  { %v665_v38 = vpop.permute.xlu2 %664 }
 0x738   :  { %v667_v39 = vadd.f32 %v665_v38, %v661_v37 }
 0x73a   :  { %1150 = vtanh.f32 %v667_v39 }
 0x740   :  { %v1151_v40 = vpop.eup %1150 }
 0x741   :  { %v669_v41 = vmul.f32 %v1151_v40, %v660_v35 }
 0x743   :  { %671 = vrot.lane.b32.xlu0 %v669_v41, %s1189_s3 }
 0x7b5   :  { %v672_v42 = vpop.permute.xlu0 %671 }
 0x7b6   :  { %1074 = vmatmul.msk.f32.vlgmr.msra.gmra.mxu2 %vm181_vm10, %v672_v42  ;;  %1075 = vmatmul.msk.f32.vlgmr.msra.gmra.mxu3 %vm181_vm10, %v672_v42 }
 0x839   :  { %v692_v45 = vpop.f32.mrf.mxu2  ;;  %v712_v47 = vpop.f32.mrf.mxu3 }
 0x83a   :  { %v715_v48 = vadd.f32 %v692_v45, %v107_v43  ;;  %v716_v49 = vadd.f32 %v712_v47, %v148_v44 }
 0x83c   :  { %v1076_v50 = vmul.f32 -1.442695, %v715_v48  ;;  %v1077_v51 = vmul.f32 -1.442695, %v716_v49 }
 0x83e   :  { %1152 = vpow2.f32 %v1076_v50 }
 0x83f   :  { %1154 = vpow2.f32 %v1077_v51 }
 0x844   :  { %v1153_v52 = vpop.eup %1152 }
 0x845   :  { %v1155_v53 = vpop.eup %1154  ;;  %v725_v54 = vadd.f32 1.0, %v1153_v52 }
 0x846   :  { %v726_v55 = vadd.f32 1.0, %v1155_v53 }
 0x847   :  { %1156 = vrcp.f32 %v725_v54  ;;  %v738_v14 = vand.u32 2147483648, %v725_v54  ;;  %v736_v22 = vand.u32 2147483647, %v725_v54  ;;  %vm732_vm3 = vweird.f32 %v725_v54 }
 0x848   :  { %1158 = vrcp.f32 %v726_v55  ;;  %v753_v25 = vand.u32 2147483648, %v726_v55  ;;  %v751_v1 = vand.u32 2147483647, %v726_v55  ;;  %vm747_vm5 = vweird.f32 %v726_v55 }
 0x849   :  { %1160 = vtanh.f32 %v716_v49  ;;  %v739_v3 = vor.u32 1.1754944e-38, %v738_v14  ;;  %vm737_vm7 = vcmp.eq.f32.partialorder %v736_v22, 8.507059e+37 }
 0x84a   :  { %v754_v6 = vor.u32 1.1754944e-38, %v753_v25  ;;  %vm752_vm8 = vcmp.eq.f32.partialorder %v751_v1, 8.507059e+37  ;;  %v113_v1 = vadd.f32 %v1560_v62, %v1415_v23 }
 0x84d   :  { %v1157_v56 = vpop.eup %1156 }
 0x84e   :  { %v1159_v57 = vpop.eup %1158  ;;  %v728_v58 = vmul.f32 %v1157_v56, %v725_v54  ;;  %vm733_vm1 = vweird.f32 %v1157_v56 }
 0x84f   :  { %v743_v9 = vmul.f32 %v1159_v57, %v726_v55  ;;  %vm748_vm2 = vweird.f32 %v1159_v57  ;;  %vm734_vm4 = vmor %vm732_vm3, %vm733_vm1  ;;  %v1161_v7 = vpop.eup %1160 }
 0x850   :  { %v729_v10 = vsub.f32 1.0, %v728_v58  ;;  %vm749_vm0 = vmor %vm747_vm5, %vm748_vm2 }
 0x851   :  { %v744_v59 = vsub.f32 1.0, %v743_v9 }
 0x852   :  { %v730_v21 = vmul.f32 %v1157_v56, %v729_v10 }
 0x853   :  { %v745_v0 = vmul.f32 %v1159_v57, %v744_v59 }
 0x854   :  { %v731_v2 = vadd.f32 %v1157_v56, %v730_v21 }
 0x855   :  { %v746_v4 = vadd.f32 %v1159_v57, %v745_v0 }
 0x856   :  { %v735_v5 = vsel %vm734_vm4, %v1157_v56, %v731_v2  ;;  %v154_v2 = vadd.f32 %v1562_v63, %v1417_v24 }
 0x857   :  { %v740_v8 = vsel %vm737_vm7, %v739_v3, %v735_v5  ;;  %v750_v11 = vsel %vm749_vm0, %v1159_v57, %v746_v4 }
 0x858   :  { %v755_v15 = vsel %vm752_vm8, %v754_v6, %v750_v11  ;;  %v759_v18 = vmul.f32 %v740_v8, %v667_v39 }
 0x859   :  { %v758_v16 = vsel %vm178_vm6, %v1161_v7, %v755_v15 }
 0x85a   :  { %v760_v17 = vmul.f32 %v758_v16, %v740_v8 }
 0x85c   :  { %762 = vrot.lane.b32.xlu1 %v760_v17, %s1189_s3 }
 0x8ce   :  { %v763_v19 = vpop.permute.xlu1 %762 }
 0x8cf   :  { %v765_v20 = vadd.f32 %v763_v19, %v759_v18 }
 0x8d1   :  { %1162 = vtanh.f32 %v765_v20 }
 0x8d7   :  { %v1163_v12 = vpop.eup %1162 }
 0x8d8   :  { %v767_v13 = vmul.f32 %v1163_v12, %v758_v16 }
 0x8da   :  { %769 = vrot.lane.b32.xlu2 %v767_v13, %s1189_s3 }
 0x934   :  { %v770_v26 = vpop.permute.xlu2 %769 }
 0x935   :  { %1078 = vmatmul.msk.f32.vlgmr.msra.gmra.mxu0 %vm181_vm10, %v770_v26  ;;  %1079 = vmatmul.msk.f32.vlgmr.msra.gmra.mxu1 %vm181_vm10, %v770_v26 }
 0x9b2   :  { %v790_v29 = vpop.f32.mrf.mxu0  ;;  %v810_v30 = vpop.f32.mrf.mxu1 }
 0x9b3   :  { %v813_v31 = vadd.f32 %v790_v29, %v110_v27  ;;  %v814_v32 = vadd.f32 %v810_v30, %v151_v28 }
 0x9b5   :  { %v1080_v33 = vmul.f32 -1.442695, %v813_v31  ;;  %v1081_v34 = vmul.f32 -1.442695, %v814_v32 }
 0x9b7   :  { %1164 = vpow2.f32 %v1080_v33 }
 0x9b8   :  { %1166 = vpow2.f32 %v1081_v34 }
 0x9bd   :  { %v1165_v35 = vpop.eup %1164 }
 0x9be   :  { %v1167_v36 = vpop.eup %1166  ;;  %v823_v37 = vadd.f32 1.0, %v1165_v35 }
 0x9bf   :  { %v824_v38 = vadd.f32 1.0, %v1167_v36 }
 0x9c0   :  { %1168 = vrcp.f32 %v823_v37  ;;  %v836_v43 = vand.u32 2147483648, %v823_v37  ;;  %v834_v45 = vand.u32 2147483647, %v823_v37  ;;  %vm830_vm12 = vweird.f32 %v823_v37 }
 0x9c1   :  { %1170 = vrcp.f32 %v824_v38  ;;  %v851_v47 = vand.u32 2147483648, %v824_v38  ;;  %v849_v49 = vand.u32 2147483647, %v824_v38  ;;  %vm845_vm14 = vweird.f32 %v824_v38 }
 0x9c2   :  { %1172 = vtanh.f32 %v814_v32  ;;  %v837_v51 = vor.u32 1.1754944e-38, %v836_v43  ;;  %vm835_vm15 = vcmp.eq.f32.partialorder %v834_v45, 8.507059e+37  ;;  %v965_v43 = vld [vmem:[%s1655_s4 + $0x8] sm:$0xff] }
 0x9c3   :  { %v852_v54 = vor.u32 1.1754944e-38, %v851_v47  ;;  %vm850_vm2 = vcmp.eq.f32.partialorder %v849_v49, 8.507059e+37 }
 0x9c6   :  { %v1169_v39 = vpop.eup %1168 }
 0x9c7   :  { %v1171_v40 = vpop.eup %1170  ;;  %v826_v60 = vmul.f32 %v1169_v39, %v823_v37  ;;  %vm831_vm9 = vweird.f32 %v1169_v39 }
 0x9c8   :  { %v841_v41 = vmul.f32 %v1171_v40, %v824_v38  ;;  %vm846_vm11 = vweird.f32 %v1171_v40  ;;  %vm832_vm13 = vmor %vm830_vm12, %vm831_vm9  ;;  %v1173_v55 = vpop.eup %1172 }
 0x9c9   :  { %v827_v42 = vsub.f32 1.0, %v826_v60  ;;  %vm847_vm1 = vmor %vm845_vm14, %vm846_vm11  ;;  %v970_v60 = vld [vmem:[%s1655_s4 + $0x30] sm:$0xff] }
 0x9ca   :  { %v842_v61 = vsub.f32 1.0, %v841_v41  ;;  %v969_v41 = vld [vmem:[%s1655_s4 + $0x28] sm:$0xff] }
 0x9cb   :  { %v828_v44 = vmul.f32 %v1169_v39, %v827_v42  ;;  %v967_v42 = vld [vmem:[%s1655_s4 + $0x18] sm:$0xff] }
 0x9cc   :  { %v843_v48 = vmul.f32 %v1171_v40, %v842_v61  ;;  %v966_v61 = vld [vmem:[%s1655_s4 + $0x10] sm:$0xff] }
 0x9cd   :  { %v829_v50 = vadd.f32 %v1169_v39, %v828_v44  ;;  %v964_v44 = vld [vmem:[%s1655_s4] sm:$0xff] }
 0x9ce   :  { %v844_v52 = vadd.f32 %v1171_v40, %v843_v48 }
 0x9cf   :  { %v833_v53 = vsel %vm832_vm13, %v1169_v39, %v829_v50 }
 0x9d0   :  { %v838_v56 = vsel %vm835_vm15, %v837_v51, %v833_v53  ;;  %v848_v57 = vsel %vm847_vm1, %v1171_v40, %v844_v52  ;;  %v971_v40 = vld [vmem:[%s1655_s4 + $0x38] sm:$0xff]  ;;  %v1004_v52 = vld [vmem:[%s1657_s6 + $0x10] sm:$0xff] }
 0x9d1   :  { %v853_v58 = vsel %vm850_vm2, %v852_v54, %v848_v57  ;;  %v857_v59 = vmul.f32 %v838_v56, %v765_v20  ;;  %989 = vmatpush.msrb.mxu0 %v971_v40  ;;  %v1005_v51 = vld [vmem:[%s1657_s6 + $0x18] sm:$0xff]  ;;  %v1003_v54 = vld [vmem:[%s1657_s6 + $0x8] sm:$0xff]  ;;  %v1090_v57 = vld [vmem:[%s1656_s5] ss:$0 sm:$0xff] }
 0x9d2   :  { %v856_v9 = vsel %vm178_vm6, %v1173_v55, %v853_v58  ;;  %1026 = vmatpush.msrb.mxu1 %v1005_v51  ;;  %v1002_v55 = vld [vmem:[%s1657_s6] sm:$0xff] }
 0x9d3   :  { %v858_v10 = vmul.f32 %v856_v9, %v838_v56  ;;  %990 = vmatpush.msrb.mxu0 %v970_v60  ;;  %v13_v56 = vstv %s1658_s7 }
 0x9d4   :  { %1027 = vmatpush.msrb.mxu1 %v1004_v52  ;;  %14 = vst [vmem:[#allocation2] sm:$0x1] %v13_v56 }
 0x9d5   :  { %860 = vrot.lane.b32.xlu0 %v858_v10, %s1189_s3  ;;  %991 = vmatpush.msrb.mxu0 %v969_v41 }
 0x9d6   :  { %1028 = vmatpush.msrb.mxu1 %v1003_v54 }
 0x9d7   :  { %992 = vmatpush.msrb.mxu0 %v968_v46 }
 0x9d8   :  { %1029 = vmatpush.msrb.mxu1 %v1002_v55 }
 0x9d9   :  { %993 = vmatpush.msrb.mxu0 %v967_v42 }
 0x9db   :  { %994 = vmatpush.msrb.mxu0 %v966_v61 }
 0x9dd   :  { %995 = vmatpush.msrb.mxu0 %v965_v43 }
 0x9df   :  { %996 = vmatpush.msrb.mxu0 %v964_v44 }
 0xa47   :  { %v861_v14 = vpop.permute.xlu0 %860 }
 0xa48   :  { %v1590_v21 = vadd.f32 %v861_v14, %v857_v59  ;;  %v1091_v59 = vld [vmem:[#allocation2] ss:$0 sm:$0xff] }
 0xa4a   :  { %1174 = vtanh.f32 %v1590_v21 }
 0xa50   :  { %v1175_v22 = vpop.eup %1174 }
 0xa51   :  { %v865_v25 = vmul.f32 %v1175_v22, %v856_v9 }
 0xa53   :  { %867 = vrot.lane.b32.xlu1 %v865_v25, %s1189_s3 }
 0xac5   :  { %v868_v0 = vpop.permute.xlu1 %867 }
 0xac6   :  { %1082 = vmatmul.msk.f32.vlgmr.msrb.gmra.mxu2 %vm181_vm10, %v868_v0  ;;  %1083 = vmatmul.msk.f32.vlgmr.msrb.gmra.mxu3 %vm181_vm10, %v868_v0 }
 0xb49   :  { %v888_v3 = vpop.f32.mrf.mxu2  ;;  %v908_v4 = vpop.f32.mrf.mxu3 }
 0xb4a   :  { %v911_v5 = vadd.f32 %v888_v3, %v113_v1  ;;  %v912_v6 = vadd.f32 %v908_v4, %v154_v2 }
 0xb4c   :  { %v1084_v7 = vmul.f32 -1.442695, %v911_v5  ;;  %v1085_v8 = vmul.f32 -1.442695, %v912_v6 }
 0xb4e   :  { %1176 = vpow2.f32 %v1084_v7 }
 0xb4f   :  { %1178 = vpow2.f32 %v1085_v8 }
 0xb54   :  { %v1177_v11 = vpop.eup %1176 }
 0xb55   :  { %v1179_v15 = vpop.eup %1178  ;;  %v921_v16 = vadd.f32 1.0, %v1177_v11 }
 0xb56   :  { %v922_v17 = vadd.f32 1.0, %v1179_v15 }
 0xb57   :  { %1180 = vrcp.f32 %v921_v16  ;;  %v934_v63 = vand.u32 2147483648, %v921_v16  ;;  %v932_v13 = vand.u32 2147483647, %v921_v16  ;;  %vm928_vm5 = vweird.f32 %v921_v16 }
 0xb58   :  { %1182 = vrcp.f32 %v922_v17  ;;  %v949_v26 = vand.u32 2147483648, %v922_v17  ;;  %v947_v28 = vand.u32 2147483647, %v922_v17  ;;  %vm943_vm0 = vweird.f32 %v922_v17 }
 0xb59   :  { %1184 = vtanh.f32 %v912_v6  ;;  %v935_v30 = vor.u32 1.1754944e-38, %v934_v63  ;;  %vm933_vm8 = vcmp.eq.f32.partialorder %v932_v13, 8.507059e+37 }
 0xb5a   :  { %v950_v33 = vor.u32 1.1754944e-38, %v949_v26  ;;  %vm948_vm11 = vcmp.eq.f32.partialorder %v947_v28, 8.507059e+37 }
 0xb5d   :  { %v1181_v18 = vpop.eup %1180 }
 0xb5e   :  { %v1183_v19 = vpop.eup %1182  ;;  %v924_v23 = vmul.f32 %v1181_v18, %v921_v16  ;;  %vm929_vm3 = vweird.f32 %v1181_v18 }
 0xb5f   :  { %v939_v62 = vmul.f32 %v1183_v19, %v922_v17  ;;  %vm944_vm4 = vweird.f32 %v1183_v19  ;;  %vm930_vm7 = vmor %vm928_vm5, %vm929_vm3  ;;  %v1185_v34 = vpop.eup %1184 }
 0xb60   :  { %v925_v20 = vsub.f32 1.0, %v924_v23  ;;  %vm945_vm9 = vmor %vm943_vm0, %vm944_vm4 }
 0xb61   :  { %v940_v24 = vsub.f32 1.0, %v939_v62 }
 0xb62   :  { %v926_v12 = vmul.f32 %v1181_v18, %v925_v20 }
 0xb63   :  { %v941_v27 = vmul.f32 %v1183_v19, %v940_v24 }
 0xb64   :  { %v927_v29 = vadd.f32 %v1181_v18, %v926_v12 }
 0xb65   :  { %v942_v31 = vadd.f32 %v1183_v19, %v941_v27 }
 0xb66   :  { %v931_v32 = vsel %vm930_vm7, %v1181_v18, %v927_v29 }
 0xb67   :  { %v936_v35 = vsel %vm933_vm8, %v935_v30, %v931_v32  ;;  %v946_v36 = vsel %vm945_vm9, %v1183_v19, %v942_v31 }
 0xb68   :  { %v951_v37 = vsel %vm948_vm11, %v950_v33, %v946_v36  ;;  %v955_v45 = vmul.f32 %v936_v35, %v1590_v21 }
 0xb69   :  { %v954_v38 = vsel %vm178_vm6, %v1185_v34, %v951_v37  ;;  %vm1010_vm6 = vcmask 261120  }
 0xb6a   :  { %v956_v39 = vmul.f32 %v954_v38, %v936_v35 }
 0xb6c   :  { %958 = vrot.lane.b32.xlu2 %v956_v39, %s1189_s3 }
 0xbc6   :  { %v959_v47 = vpop.permute.xlu2 %958 }
 0xbc7   :  { %v961_v48 = vadd.f32 %v959_v47, %v955_v45 }
 0xbc9   :  { %1186 = vtanh.f32 %v961_v48 }
 0xbcf   :  { %v1187_v49 = vpop.eup %1186 }
 0xbd0   :  { %v963_v50 = vmul.f32 %v1187_v49, %v954_v38 }
 0xbd2   :  { %977 = vrot.lane.b32.xlu0 %v963_v50, %s1189_s3 }
 0xc44   :  { %v978_v53 = vpop.permute.xlu0 %977 }
 0xc45   :  { %1086 = vmatmul.msk.f32.vlgmr.msrb.gmra.mxu0 %vm181_vm10, %v978_v53  ;;  %vm1034_vm10 = vcmask 7168  }
 0xcc2   :  { %v998_v58 = vpop.f32.mrf.mxu0 }
 0xcc3   :  { %v999_v9 = vadd.f32 %v1090_v57, %v998_v58 }
 0xcc5   :  { %v1001_v10 = vmax.f32 %v999_v9, 0.0 }
 0xcc7   :  { %1087 = vmatmul.msk.f32.vlgmr.msrb.gmra.mxu1 %vm1010_vm6, %v1001_v10 }
 0xd44   :  { %v1031_v14 = vpop.f32.mrf.mxu1 }
 0xd45   :  { %v1032_v21 = vadd.f32 %v1091_v59, %v1031_v14 }
 0xd47   :  { %1035 = vst.msk [vmem:[%s1659_s8] sm:$0xff] %vm1034_vm10, %v1032_v21 }

</bundles_post_ra>
